<compile_context>
chip_gen: v7x
topology: tpu7x:2x2x1
jax: 0.10.0
libtpu: 0.0.40
codegen_flags: <defaults>
</compile_context>

<pallas_src>
import functools

import jax
import jax.numpy as jnp
from jax.experimental import pallas as pl
from jax.experimental.pallas import tpu as pltpu

LANES = 128
TILE_R_MAX = 2048                 # rows per streaming block -> 1 MiB f32 block
FUSED_MAX_ELEMS = 1 << 20         # <= 4 MiB f32 slab -> single fused kernel
VMEM_LIMIT = 32 * 1024 * 1024


def _num_partitions():
    """2 pass-1 partitions on 2-TensorCore chips (v7x / v4 / v5p), else 1."""
    try:
        kind = jax.devices()[0].device_kind.lower()
    except Exception:
        return 1
    return 2 if ("v7" in kind or "v4" in kind or "v5p" in kind) else 1


def _round_up(v, m):
    return ((v + m - 1) // m) * m


# --------------------------- fused single-pass kernel ---------------------------
def _fused_kernel(x_ref, o_ref, *, n, lane_pad, m0, var0, eps):
    xf = x_ref[...].astype(jnp.float32)
    if lane_pad:                                    # static: only for ragged shapes
        row = jax.lax.broadcasted_iota(jnp.int32, xf.shape, 0)
        col = jax.lax.broadcasted_iota(jnp.int32, xf.shape, 1)
        xs = jnp.where(row * LANES + col < n, xf, 0.0)
    else:
        xs = xf
    s = jnp.sum(xs)
    sq = jnp.sum(xs * xs)
    nf = jnp.float32(n)
    mean = s / nf
    var = (sq - s * s / nf) / (nf - 1.0)            # torch.var() default: unbiased
    a = jnp.sqrt(jnp.float32(var0) / jnp.maximum(var, jnp.float32(eps)))
    b = jnp.float32(m0) - a * mean
    o_ref[...] = (a * xf + b).astype(o_ref.dtype)


# ------------------------ pass 1: streaming sum / sumsq -------------------------
def _reduce_kernel(x_ref, sum_ref, sq_ref, acc_sum, acc_sq, *,
                   bpp, nblocks, tile_r, rows):
    p = pl.program_id(0)
    i = pl.program_id(1)

    @pl.when(i == 0)
    def _():
        acc_sum[...] = jnp.zeros_like(acc_sum)
        acc_sq[...] = jnp.zeros_like(acc_sq)

    blk = p * bpp + i                               # logical (unclamped) row-block index

    def accumulate(xb):
        # (tile_r,128) -> (tile_r//8, 8, 128) is a tile-aligned view; the axis-0 sum
        # is a chain of vreg adds (pure VPU), so the live accumulators stay one vreg
        # each instead of round-tripping a (tile_r,128) buffer through VMEM per step.
        xg = xb.reshape(tile_r // 8, 8, LANES)
        acc_sum[...] += xg.sum(axis=0)
        acc_sq[...] += (xg * xg).sum(axis=0)

    @pl.when(blk < nblocks - 1)
    def _():                                        # interior blocks: unmasked fast path
        accumulate(x_ref[...].astype(jnp.float32))

    @pl.when(blk >= nblocks - 1)
    def _():                                        # ragged tail / duplicated clamped block
        row = jax.lax.broadcasted_iota(jnp.int32, (tile_r, LANES), 0)
        valid = (blk * tile_r + row) < rows
        accumulate(jnp.where(valid, x_ref[...].astype(jnp.float32), 0.0))

    @pl.when(i == bpp - 1)
    def _():                                        # one XLU reduce per partition
        sum_ref[...] = jnp.full((1, 8, LANES), jnp.sum(acc_sum[...]), jnp.float32)
        sq_ref[...] = jnp.full((1, 8, LANES), jnp.sum(acc_sq[...]), jnp.float32)


# --------------------------- pass 2: streaming FMA ------------------------------
def _apply_kernel(sc_ref, x_ref, o_ref):
    a = sc_ref[0]
    b = sc_ref[1]
    o_ref[...] = (a * x_ref[...].astype(jnp.float32) + b).astype(o_ref.dtype)


def normalize_module(x, m0, var0, eps=1e-6):
    orig_shape = x.shape
    orig_dtype = x.dtype
    n = x.size
    m0, var0, eps = float(m0), float(var0), float(eps)

    rows = pl.cdiv(n, LANES)
    lane_pad = rows * LANES - n

    flat = x.reshape(-1)                            # free reshape, original dtype
    if lane_pad:
        # TODO(synk): ragged (n % 128 != 0) inputs still pay a pad + final-slice copy;
        # a copy-free tail path needs 1-D blocking, which is layout-risky on Mosaic.
        flat = jnp.pad(flat, (0, lane_pad))
    x2 = flat.reshape(rows, LANES)

    # dtype-aware sublane multiple (8 for f32, 16 for bf16, 32 for int8/fp8)
    sub = 8 * max(1, 4 // max(1, jnp.dtype(orig_dtype).itemsize))
    tile_r = min(TILE_R_MAX, _round_up(rows, sub))

    if n <= FUSED_MAX_ELEMS:
        # ------------- fused path: x resident in VMEM, 2N HBM traffic -------------
        y2 = pl.pallas_call(
            functools.partial(_fused_kernel, n=n, lane_pad=lane_pad,
                              m0=m0, var0=var0, eps=eps),
            out_shape=jax.ShapeDtypeStruct((rows, LANES), orig_dtype),
            grid=(1,),
            in_specs=[pl.BlockSpec((rows, LANES), lambda i: (0, 0))],
            out_specs=pl.BlockSpec((rows, LANES), lambda i: (0, 0)),
            compiler_params=pltpu.CompilerParams(vmem_limit_bytes=VMEM_LIMIT),
        )(x2)
    else:
        # ----------------------- two-pass streaming path --------------------------
        nblocks = pl.cdiv(rows, tile_r)
        npart = max(1, min(_num_partitions(), nblocks))
        bpp = pl.cdiv(nblocks, npart)               # row-blocks per partition

        reduce_fn = functools.partial(_reduce_kernel, bpp=bpp, nblocks=nblocks,
                                      tile_r=tile_r, rows=rows)
        x_map = lambda p, i: (jnp.minimum(p * bpp + i, nblocks - 1), 0)
        part_map = lambda p, i: (p, 0, 0)

        s_parts, sq_parts = pl.pallas_call(
            reduce_fn,
            out_shape=(jax.ShapeDtypeStruct((npart, 8, LANES), jnp.float32),
                       jax.ShapeDtypeStruct((npart, 8, LANES), jnp.float32)),
            grid=(npart, bpp),
            in_specs=[pl.BlockSpec((tile_r, LANES), x_map)],
            out_specs=(pl.BlockSpec((1, 8, LANES), part_map),
                       pl.BlockSpec((1, 8, LANES), part_map)),
            scratch_shapes=[pltpu.VMEM((8, LANES), jnp.float32),
                            pltpu.VMEM((8, LANES), jnp.float32)],
            compiler_params=pltpu.CompilerParams(
                dimension_semantics=("parallel", "arbitrary"),
                vmem_limit_bytes=VMEM_LIMIT),
        )(x2)

        # Tiny scalar glue (negligible vs the two N-sized streams here; small/medium
        # inputs never reach this branch -- they take the fused path above).
        # NOTE: single-pass (sumsq - sum^2/n) variance in f32 loses precision when
        # |mean| >> std and n is huge; accepted error budget (documented).
        s = jnp.sum(s_parts[:, 0, 0])
        sq = jnp.sum(sq_parts[:, 0, 0])
        nf = jnp.float32(n)
        mean = s / nf
        var = (sq - s * s / nf) / (nf - 1.0)        # torch.var() default: unbiased
        a = jnp.sqrt(jnp.float32(var0) / jnp.maximum(var, jnp.float32(eps)))
        b = jnp.float32(m0) - a * mean              # out = a*x + b == sqrt/where form
        scalars = jnp.stack([a, b]).astype(jnp.float32)

        y2 = pl.pallas_call(
            _apply_kernel,
            out_shape=jax.ShapeDtypeStruct((rows, LANES), orig_dtype),
            grid=(nblocks,),
            in_specs=[pl.BlockSpec(memory_space=pltpu.MemorySpace.SMEM),
                      pl.BlockSpec((tile_r, LANES), lambda i: (i, 0))],
            out_specs=pl.BlockSpec((tile_r, LANES), lambda i: (i, 0)),
            compiler_params=pltpu.CompilerParams(
                dimension_semantics=("parallel",),
                vmem_limit_bytes=VMEM_LIMIT),
        )(scalars, x2)

    if lane_pad:
        y = y2.reshape(-1)[:n].reshape(orig_shape)
    else:
        y = y2.reshape(orig_shape)                  # free reshape, original dtype
    return y


def _reference(x, m0, var0, eps=1e-6):
    xf = x.astype(jnp.float32)
    x_m = jnp.mean(xf)
    x_var = jnp.var(xf, ddof=1)                     # torch.var default is unbiased
    y = jnp.sqrt(var0 * (xf - x_m) ** 2 / jnp.maximum(x_var, eps))
    return jnp.where(xf > x_m, m0 + y, m0 - y).astype(x.dtype)


if __name__ == "__main__":
    key = jax.random.PRNGKey(0)
    # NCHW, as the PyTorch module would receive.
    x = jax.random.normal(key, (2, 4, 16, 16), dtype=jnp.float32) * 3.0 + 1.5

    m0, var0 = 0.5, 0.25  # deterministic "module params" (given at __init__)

    out = normalize_module(x, m0, var0)
    out = jax.block_until_ready(out)

    ref = _reference(x, m0, var0)
    assert out.shape == x.shape and out.dtype == x.dtype
    assert jnp.allclose(out, ref, rtol=1e-5, atol=1e-5), "mismatch vs reference"

    print("KERNEL_OK")
</pallas_src>

<mosaic_0001>
module attributes {stable_mosaic.version = 11 : i64} {
  func.func @_fused_kernel(%arg0: i32, %arg1: memref<16x128xf32, #tpu.memory_space<vmem>>, %arg2: memref<16x128xf32, #tpu.memory_space<vmem>>) attributes {dimension_semantics = [#tpu.dimension_semantics<arbitrary>], iteration_bounds = array<i64: 1>, scalar_prefetch = 0 : i64, scratch_operands = 0 : i64, tpu.core_type = #tpu.core_type<tc>, window_params = [{pipeline_mode = #tpu.pipeline_mode<synchronous>, transform_indices = @transform_0, window_bounds = array<i64: 16, 128>}, {pipeline_mode = #tpu.pipeline_mode<synchronous>, transform_indices = @transform_1, window_bounds = array<i64: 16, 128>}]} {
    %c0 = arith.constant 0 : index
    %c0_0 = arith.constant 0 : index
    %0 = vector.load %arg1[%c0, %c0_0] : memref<16x128xf32, #tpu.memory_space<vmem>>, vector<16x128xf32>
    %1 = vector.shape_cast %0 : vector<16x128xf32> to vector<1x16x128xf32>
    %cst = arith.constant dense<0.000000e+00> : vector<1xf32>
    %2 = vector.multi_reduction <add>, %1, %cst [1, 2] : vector<1x16x128xf32> to vector<1xf32>
    %3 = vector.shape_cast %2 : vector<1xf32> to vector<1x1x1xf32>
    %4 = vector.extract %3[0, 0, 0] : f32 from vector<1x1x1xf32>
    %5 = arith.mulf %0, %0 : vector<16x128xf32>
    %6 = vector.shape_cast %5 : vector<16x128xf32> to vector<1x16x128xf32>
    %cst_1 = arith.constant dense<0.000000e+00> : vector<1xf32>
    %7 = vector.multi_reduction <add>, %6, %cst_1 [1, 2] : vector<1x16x128xf32> to vector<1xf32>
    %8 = vector.shape_cast %7 : vector<1xf32> to vector<1x1x1xf32>
    %9 = vector.extract %8[0, 0, 0] : f32 from vector<1x1x1xf32>
    %cst_2 = arith.constant 2.048000e+03 : f32
    %10 = arith.divf %4, %cst_2 : f32
    %11 = arith.mulf %4, %4 : f32
    %cst_3 = arith.constant 2.048000e+03 : f32
    %12 = arith.divf %11, %cst_3 : f32
    %13 = arith.subf %9, %12 : f32
    %cst_4 = arith.constant 2.048000e+03 : f32
    %cst_5 = arith.constant 1.000000e+00 : f32
    %14 = arith.subf %cst_4, %cst_5 : f32
    %15 = arith.divf %13, %14 : f32
    %cst_6 = arith.constant 9.99999997E-7 : f32
    %16 = arith.maximumf %15, %cst_6 : f32
    %cst_7 = arith.constant 2.500000e-01 : f32
    %17 = arith.divf %cst_7, %16 : f32
    %18 = math.sqrt %17 : f32
    %19 = arith.mulf %18, %10 : f32
    %cst_8 = arith.constant 5.000000e-01 : f32
    %20 = arith.subf %cst_8, %19 : f32
    %21 = vector.broadcast %18 : f32 to vector<16x128xf32>
    %22 = arith.mulf %21, %0 : vector<16x128xf32>
    %23 = vector.broadcast %20 : f32 to vector<16x128xf32>
    %24 = arith.addf %22, %23 : vector<16x128xf32>
    %c0_9 = arith.constant 0 : index
    %c0_10 = arith.constant 0 : index
    %25 = vector.load %arg2[%c0_9, %c0_10] : memref<16x128xf32, #tpu.memory_space<vmem>>, vector<16x128xf32>
    tpu.vector_store %arg2[%c0_9, %c0_10], %24 {strides = array<i32>} : memref<16x128xf32, #tpu.memory_space<vmem>>, vector<16x128xf32>,
    return
  }
  func.func @transform_0(%arg0: i32) -> (i32, i32) {
    %c0_i32 = arith.constant 0 : i32
    %c0_i32_0 = arith.constant 0 : i32
    %c0_i32_1 = arith.constant 0 : i32
    return %c0_i32, %c0_i32_0 : i32, i32
  }
  func.func @transform_1(%arg0: i32) -> (i32, i32) {
    %c0_i32 = arith.constant 0 : i32
    %c0_i32_0 = arith.constant 0 : i32
    %c0_i32_1 = arith.constant 0 : i32
    return %c0_i32, %c0_i32_0 : i32, i32
  }
}

</mosaic_0001>

<bundles_post_ra>
// kernel: tpu_custom_call.1
= control target key start
LH: loop header
LB: loop body
LE: loop exit
PB: predicated region body
PF: predicated region fallthrough
CT: control target
= control target key end

     0   :  { %6 = vsyncpa [#allocation3], 0  ;;  %s209_s0 = inlined_call_operand.hbm [shape: f32[16,128], index: 0, kind: input, shape index: {}]   ;;  %s210_s1 = inlined_call_operand.hbm [shape: f32[16,128], index: 1, kind: output, shape index: {}]  }
   0x1   :  { %7 = vsyncpa [#allocation4], 0  ;;  %s164_s6 = smov [#allocation2]   ;;  %s116_s10 = scalar_lea.hbm %s209_s0, 256 }
   0x2   :  { %s13_s7 = sshll.u32 %s164_s6, 4  ;;  %p117_p0 = scmp.ne.s32.totalorder %s209_s0, %s116_s10  ;;  %s14_s7 = int_to_ptr.vmem [resolvable:$true] %s13_s7 }
   0x3   :  { %p120_p1 = scmp.lt.u32.totalorder %s116_s10, %s209_s0 }
   0x5   :  { %p122_p2 = pnand %p120_p1, %p117_p0 }
   0x7   :  { %125 = shalt.err (!%p122_p2)
}
   0x8   :  { %s126_s15 = scalar_lea.vmem %s14_s7, 256  ;;  %p131_p4 = scmp.lt.s32.totalorder %s14_s7, %s14_s7 }
   0x9   :  { %p127_p3 = scmp.ne.s32.totalorder %s14_s7, %s126_s15  ;;  %p132_p5 = scmp.lt.s32.totalorder %s126_s15, %s126_s15 }
   0xb   :  { %p133_p6 = por %p132_p5, %p131_p4 }
   0xd   :  { %p134_p7 = pnand %p133_p6, %p127_p3 }
   0xf   :  { %137 = shalt.err (!%p134_p7)
}
  0x10   :  { %s165_s16 = smov 128   ;;  %s166_s17 = smov 8  }
  0x11   :  { %19 = dma.hbm_to_vmem [thread:$0]  %s209_s0, 256, %s14_s7, [#allocation3], %s165_s16, %s165_s16, %s166_s17  }
  0x12   :  { %160 = dma.done.wait [#allocation3], 256  }
  0x13   :  { %161 = vsyncadd [#allocation3], 4294967040  ;;  %v23_v0 = vld [vmem:[#allocation2] sm:$0xff]  ;;  %v24_v1 = vld [vmem:[#allocation2 + $0x8] sm:$0xff]  ;;  %s167_s25 = smov 1e-06  }
  0x14   :  { %v25_v2 = vadd.f32 %v24_v1, %v23_v0  ;;  %v35_v3 = vmul.f32 %v23_v0, %v23_v0  ;;  %v36_v4 = vmul.f32 %v24_v1, %v24_v1  ;;  %s168_s4 = smov [#allocation5]  }
  0x15   :  { %s87_s5 = sshll.u32 %s168_s4, 4  ;;  %s88_s5 = int_to_ptr.vmem [resolvable:$true] %s87_s5 }
  0x16   :  { %26 = vadd.xlane.f32.xlu0 %v25_v2  ;;  %v37_v5 = vadd.f32 %v36_v4, %v35_v3  ;;  %s138_s6 = scalar_lea.vmem %s88_s5, 256  ;;  %p143_p9 = scmp.lt.s32.totalorder %s88_s5, %s88_s5 }
  0x17   :  { %p139_p8 = scmp.ne.s32.totalorder %s88_s5, %s138_s6  ;;  %p144_p10 = scmp.lt.s32.totalorder %s138_s6, %s138_s6 }
  0x19   :  { %p145_p11 = por %p144_p10, %p143_p9 }
  0x1a   :  { %38 = vadd.xlane.f32.xlu0 %v37_v5 }
  0x1b   :  { %p146_p12 = pnand %p145_p11, %p139_p8 }
  0xa3   :  { %v27_v6 = vpop.xlane.xlu0 %26 }
  0xa4   :  { %v28_v7 = vrot.slane %v27_v6, 4 }
  0xa6   :  { %v29_v8 = vadd.f32 %v28_v7, %v27_v6 }
  0xa7   :  { %v39_v9 = vpop.xlane.xlu0 %38 }
  0xa8   :  { %v30_v10 = vrot.slane %v29_v8, 2  ;;  %v40_v11 = vrot.slane %v39_v9, 4 }
  0xaa   :  { %v41_v12 = vadd.f32 %v40_v11, %v39_v9  ;;  %v31_v13 = vadd.f32 %v30_v10, %v29_v8 }
  0xac   :  { %v42_v14 = vrot.slane %v41_v12, 2  ;;  %v32_v15 = vrot.slane %v31_v13, 1 }
  0xae   :  { %v43_v16 = vadd.f32 %v42_v14, %v41_v12  ;;  %v33_v17 = vadd.f32 %v32_v15, %v31_v13 }
  0xb0   :  { %99 = vpush %v33_v17  ;;  %v44_v18 = vrot.slane %v43_v16, 1 }
  0xb2   :  { %v45_v19 = vadd.f32 %v44_v18, %v43_v16 }
  0xb4   :  { %101 = vpush %v45_v19 }
  0xe1   :  { %s100_s0 = spop %99 }
  0xe2   :  { %s50_s20 = smul.f32 %s100_s0, %s100_s0 }
  0xe3   :  { %s49_s29 = smul.f32 0.00048828125, %s100_s0 }
  0xe4   :  { %s53_s21 = smul.f32 0.00048828125, %s50_s20 }
  0xe5   :  { %s102_s22 = spop %101 }
  0xe6   :  { %s54_s23 = ssub.f32 %s102_s22, %s53_s21 }
  0xe8   :  { %s57_s24 = smul.f32 0.0004885198, %s54_s23 }
  0xea   :  { %s58_s26 = smax.f32 %s167_s25, %s57_s24 }
  0xeb   :  { %v59_v20 = vstv %s58_s26 }
  0xec   :  { %112 = vrcp.f32 %v59_v20 }
  0xf6   :  { %v113_v21 = vpop.eup %112 }
  0xf7   :  { %103 = vpush %v113_v21 }
 0x128   :  { %s104_s27 = spop %103 }
 0x129   :  { %s62_s28 = smul.f32 0.25, %s104_s27 }
 0x12b   :  { %v63_v22 = vstv %s62_s28 }
 0x12c   :  { %114 = vrsqrt.f32 %v63_v22  ;;  %vm66_vm0 = vcmp.eq.f32.partialorder %v63_v22, inf  ;;  %v69_v25 = vand.u32 2147483648, %v63_v22  ;;  %vm68_vm1 = vcmp.eq.f32.partialorder %v63_v22, 0.0 }
 0x136   :  { %v115_v23 = vpop.eup %114 }
 0x137   :  { %v65_v24 = vmul.f32 %v115_v23, %v63_v22 }
 0x139   :  { %v67_v26 = vsel %vm66_vm0, %v63_v22, %v65_v24 }
 0x13a   :  { %v70_v27 = vsel %vm68_vm1, %v69_v25, %v67_v26 }
 0x13b   :  { %105 = vpush %v70_v27 }
 0x16c   :  { %s106_s30 = spop %105 }
 0x16d   :  { %s72_s2 = smul.f32 %s106_s30, %s49_s29  ;;  %v74_v28 = vstv %s106_s30 }
 0x16e   :  { %v75_v29 = vmul.f32 %v74_v28, %v23_v0  ;;  %v76_v30 = vmul.f32 %v74_v28, %v24_v1 }
 0x16f   :  { %s73_s3 = ssub.f32 0.5, %s72_s2 }
 0x171   :  { %v77_v31 = vstv %s73_s3 }
 0x172   :  { %v78_v32 = vadd.f32 %v77_v31, %v75_v29  ;;  %v79_v33 = vadd.f32 %v77_v31, %v76_v30 }
 0x174   :  { %80 = vst [vmem:[#allocation5] sm:$0xff] %v78_v32  ;;  %81 = vst [vmem:[#allocation5 + $0x8] sm:$0xff] %v79_v33 }
 0x175   :  { %149 = shalt.err (!%p146_p12)
}
 0x176   :  { %s150_s9 = scalar_lea.hbm %s210_s1, 256 }
 0x177   :  { %p151_p13 = scmp.ne.s32.totalorder %s210_s1, %s150_s9  ;;  %p154_p0 = scmp.lt.u32.totalorder %s150_s9, %s210_s1 }
 0x179   :  { %p156_p1 = pnand %p154_p0, %p151_p13 }
 0x17b   :  { %159 = shalt.err (!%p156_p1)
}
 0x17c   :  { %93 = dma.vmem_to_hbm [thread:$0]  %s88_s5, 256, %s210_s1, [#allocation4], %s165_s16, %s165_s16, %s166_s17  }
 0x17d   :  { %162 = dma.done.wait [#allocation4], 256  }
 0x17e   :  { %163 = vsyncadd [#allocation4], 4294967040 }
 0x17f   :  { %97 = vsyncpa [#allocation3], 1 }
 0x180   :  { %98 = vsyncpa [#allocation4], 1 }

</bundles_post_ra>
